<compile_context>
chip_gen: v7x
topology: tpu7x:2x2x1
jax: 0.10.0
libtpu: 0.0.40
codegen_flags: <defaults>
</compile_context>

<pallas_src>
import functools

import jax
import jax.numpy as jnp
import numpy as np
from jax.experimental import pallas as pl
from jax.experimental.pallas import tpu as pltpu

_MIB = 1024 * 1024


def _round_up(a, m):
    return (a + m - 1) // m * m


def _min_sublane(dtype):
    # Minimum second-minor tile for this dtype (f32: 8, bf16: 16, int8/fp8: 32).
    return {4: 8, 2: 16, 1: 32}.get(jnp.dtype(dtype).itemsize, 8)


def _tpu_vmem_capacity_bytes():
    try:
        return int(pltpu.get_tpu_info().vmem_capacity_bytes)
    except Exception:
        return 64 * _MIB  # conservative fallback (v7x per-TC)


def _tile_vmem_bytes(hw_tile, c_in, num_neurons, dtype):
    """Accurate per-grid-step VMEM footprint: double buffers + f32 acc + S."""
    it = jnp.dtype(dtype).itemsize
    sub = _min_sublane(dtype)
    x_tile = 2 * _round_up(c_in, sub) * hw_tile * it            # 2x-buffered input
    o_tile = 2 * _round_up(num_neurons, sub) * hw_tile * it     # 2x-buffered output
    acc_f32 = _round_up(num_neurons, 8) * hw_tile * 4           # f32 dot result pre-astype
    s_tile = 2 * _round_up(num_neurons, sub) * _round_up(c_in, 128) * it
    return x_tile + o_tile + acc_f32 + s_tile


def _pick_hw_tile(hw128, c_in, num_neurons, dtype, budget_bytes):
    """Largest multiple-of-128 spatial tile fitting the budget; prefer full H*W."""
    if _tile_vmem_bytes(hw128, c_in, num_neurons, dtype) <= budget_bytes:
        return hw128
    it = jnp.dtype(dtype).itemsize
    sub = _min_sublane(dtype)
    per_lane = (2 * _round_up(c_in, sub) * it
                + 2 * _round_up(num_neurons, sub) * it
                + _round_up(num_neurons, 8) * 4)
    fixed = 2 * _round_up(num_neurons, sub) * _round_up(c_in, 128) * it
    max_lanes = max(128, (budget_bytes - fixed) // max(per_lane, 1))
    tile = min(hw128, max_lanes)
    return max(128, (tile // 128) * 128)


def make_selection_counts(input_orders, c_in, num_neurons):
    """counts[n, c] = #{k : input_orders[k][n] == c}.

    Depends only on (input_orders, c_in) — hoist/cache across calls when the
    routing is static.  Built with a scatter-add (no (K, N, C) one-hot blow-up).
    """
    orders = jnp.asarray(input_orders, dtype=jnp.int32)          # (K, num_neurons)
    assert orders.ndim == 2 and orders.shape[1] == num_neurons
    rows = jnp.broadcast_to(
        jnp.arange(num_neurons, dtype=jnp.int32)[None, :], orders.shape)
    return jnp.zeros((num_neurons, c_in), jnp.float32).at[rows, orders].add(1.0)


def _restore_kernel(inv_k, s_ref, x_ref, o_ref):
    # s_ref: (num_neurons, C_in)   exact integer counts, x.dtype
    # x_ref: (C_in, HW_TILE)       one spatial tile of one batch element
    # o_ref: (num_neurons, HW_TILE)
    acc = jnp.dot(s_ref[...], x_ref[...], preferred_element_type=jnp.float32)
    # Scale the f32 accumulator by 1/K (exact weights; hidden under DMA).
    o_ref[...] = (acc * inv_k).astype(o_ref.dtype)


def shortcut_restore(x, input_orders, num_neurons, counts=None):
    """Server-side _ShortcutRestore.forward.

    x: (N, C_in, H, W); input_orders: (K, num_neurons) int32 channel indices.
    Equivalent to  sum_k index_select(x, 1, input_orders[k]) / K.
    """
    # TODO(synk): the is_client branch is a pure passthrough (return x) and the
    # root_module.calc_input_orders graph walk is host-side Python; callers pass
    # the resulting input_orders array in directly.
    if not jnp.issubdtype(x.dtype, jnp.floating):
        x = x.astype(jnp.float32)  # MXU has no integer path on v7x
    n, c_in, h, w = x.shape
    orders = jnp.asarray(input_orders, dtype=jnp.int32)
    k = int(orders.shape[0])
    if counts is None:
        counts = make_selection_counts(orders, c_in, num_neurons)
    s = counts.astype(x.dtype)          # exact integer counts (exact in bf16 for K<=256)
    inv_k = 1.0 / float(k)

    hw = h * w
    hw128 = _round_up(hw, 128)
    itemsize = jnp.dtype(x.dtype).itemsize

    # Generation-aware VMEM budgeting.
    vmem_cap = _tpu_vmem_capacity_bytes()
    if vmem_cap >= 96 * _MIB:           # v5e / v6e: 128 MiB physical VMEM
        budget, limit_cap = 40 * _MIB, 96 * _MIB
    else:                               # v7x: 64 MiB physical per TensorCore
        budget, limit_cap = 24 * _MIB, 48 * _MIB

    hw_tile = _pick_hw_tile(hw128, c_in, num_neurons, x.dtype, budget)
    n_hw_tiles = pl.cdiv(hw128, hw_tile)

    # v7x (2 TCs): split a substantial batch-1 single-tile launch so both cores
    # stream; skip for small problems where per-step overhead would dominate.
    slab_bytes = (c_in + num_neurons) * hw128 * itemsize
    if (vmem_cap < 96 * _MIB and n * n_hw_tiles == 1
            and hw128 >= 256 and slab_bytes >= 4 * _MIB):
        hw_tile = _round_up(hw128 // 2, 128)
        n_hw_tiles = pl.cdiv(hw128, hw_tile)

    hw_total = n_hw_tiles * hw_tile
    x3 = x.reshape(n, c_in, hw)
    if hw_total != hw:
        x3 = jnp.pad(x3, ((0, 0), (0, 0), (0, hw_total - hw)))

    tile_bytes = _tile_vmem_bytes(hw_tile, c_in, num_neurons, x.dtype)
    vmem_limit = int(min(limit_cap, max(32 * _MIB, tile_bytes + 4 * _MIB)))

    out3 = pl.pallas_call(
        functools.partial(_restore_kernel, inv_k),
        out_shape=jax.ShapeDtypeStruct((n, num_neurons, hw_total), x.dtype),
        grid_spec=pltpu.PrefetchScalarGridSpec(
            num_scalar_prefetch=0,
            grid=(n, n_hw_tiles),
            in_specs=[
                pl.BlockSpec((num_neurons, c_in), lambda b, t: (0, 0)),
                pl.BlockSpec((pl.Squeezed(), c_in, hw_tile),
                             lambda b, t: (b, 0, t)),
            ],
            out_specs=pl.BlockSpec((pl.Squeezed(), num_neurons, hw_tile),
                                   lambda b, t: (b, 0, t)),
        ),
        compiler_params=pltpu.CompilerParams(
            dimension_semantics=("parallel", "parallel"),
            vmem_limit_bytes=vmem_limit),
    )(s, x3)

    out3 = out3[:, :, :hw]
    return out3.reshape(n, num_neurons, h, w)


def _reference(x, input_orders, num_neurons):
    # Pure-JAX reference mirroring the PyTorch loop of index_select + accumulate + divide.
    k = input_orders.shape[0]
    n, _, h, w = x.shape
    ref = jnp.zeros((n, num_neurons, h, w), dtype=jnp.float32)
    for i in range(k):
        ref = ref + jnp.take(x.astype(jnp.float32), input_orders[i], axis=1)
    return ref / k


if __name__ == "__main__":
    key = jax.random.PRNGKey(0)
    kx, ko, kx2, ko2 = jax.random.split(key, 4)

    # Case 1: small shapes consistent with the module's forward, 128-aligned H*W.
    N, C_IN, H, W = 2, 8, 16, 16
    NUM_NEURONS = 4
    K = 3
    x = jax.random.normal(kx, (N, C_IN, H, W), dtype=jnp.float32)
    input_orders = jax.random.randint(ko, (K, NUM_NEURONS), 0, C_IN, dtype=jnp.int32)

    out = shortcut_restore(x, input_orders, NUM_NEURONS)
    out = jax.block_until_ready(out)
    assert out.shape == (N, NUM_NEURONS, H, W)
    np.testing.assert_allclose(np.asarray(out),
                               np.asarray(_reference(x, input_orders, NUM_NEURONS)),
                               rtol=1e-5, atol=1e-5)

    # Case 2: non-128-aligned spatial dim (exercises the lane-padding path).
    N2, C2, H2, W2, NN2, K2 = 2, 6, 10, 10, 3, 2
    x2 = jax.random.normal(kx2, (N2, C2, H2, W2), dtype=jnp.float32)
    orders2 = jax.random.randint(ko2, (K2, NN2), 0, C2, dtype=jnp.int32)
    out2 = jax.block_until_ready(shortcut_restore(x2, orders2, NN2))
    assert out2.shape == (N2, NN2, H2, W2)
    np.testing.assert_allclose(np.asarray(out2),
                               np.asarray(_reference(x2, orders2, NN2)),
                               rtol=1e-5, atol=1e-5)

    print("KERNEL_OK")
</pallas_src>

<mosaic_0001>
module attributes {stable_mosaic.version = 11 : i64} {
  func.func @_restore_kernel(%arg0: i32, %arg1: i32, %arg2: memref<4x8xf32, #tpu.memory_space<vmem>>, %arg3: memref<1x8x256xf32, #tpu.memory_space<vmem>>, %arg4: memref<1x4x256xf32, #tpu.memory_space<vmem>>) attributes {dimension_semantics = [#tpu.dimension_semantics<parallel>, #tpu.dimension_semantics<parallel>], iteration_bounds = array<i64: 2, 1>, scalar_prefetch = 0 : i64, scratch_operands = 0 : i64, tpu.core_type = #tpu.core_type<tc>, window_params = [{pipeline_mode = #tpu.pipeline_mode<synchronous>, transform_indices = @transform_0, window_bounds = array<i64: 4, 8>}, {transform_indices = @transform_1, window_bounds = array<i64: 1, 8, 256>}, {transform_indices = @transform_2, window_bounds = array<i64: 1, 4, 256>}]} {
    %c0 = arith.constant 0 : index
    %c0_0 = arith.constant 0 : index
    %0 = vector.load %arg2[%c0, %c0_0] : memref<4x8xf32, #tpu.memory_space<vmem>>, vector<4x8xf32>
    %c0_1 = arith.constant 0 : index
    %c0_2 = arith.constant 0 : index
    %c0_3 = arith.constant 0 : index
    %1 = vector.load %arg3[%c0_1, %c0_2, %c0_3] : memref<1x8x256xf32, #tpu.memory_space<vmem>>, vector<1x8x256xf32>
    %2 = vector.shape_cast %1 : vector<1x8x256xf32> to vector<8x256xf32>
    %cst = arith.constant dense<0.000000e+00> : vector<4x256xf32>
    %3 = tpu.matmul %0, %2, %cst {dimension_numbers = #tpu.dot_dimension_numbers<[1], [0], [0], [1], [0, 0, 1, 1], [], []>} : vector<4x8xf32>, vector<8x256xf32>, vector<4x256xf32> -> vector<4x256xf32>
    %cst_4 = arith.constant 0.333333343 : f32
    %4 = vector.broadcast %cst_4 : f32 to vector<4x256xf32>
    %5 = arith.mulf %3, %4 : vector<4x256xf32>
    %c0_5 = arith.constant 0 : index
    %c0_6 = arith.constant 0 : index
    %c0_7 = arith.constant 0 : index
    %6 = vector.load %arg4[%c0_5, %c0_6, %c0_7] : memref<1x4x256xf32, #tpu.memory_space<vmem>>, vector<1x4x256xf32>
    %7 = vector.shape_cast %6 : vector<1x4x256xf32> to vector<4x256xf32>
    %8 = vector.shape_cast %5 : vector<4x256xf32> to vector<1x4x256xf32>
    tpu.vector_store %arg4[%c0_5, %c0_6, %c0_7], %8 {strides = array<i32>} : memref<1x4x256xf32, #tpu.memory_space<vmem>>, vector<1x4x256xf32>,
    return
  }
  func.func @transform_0(%arg0: i32, %arg1: i32) -> (i32, i32) {
    %c0_i32 = arith.constant 0 : i32
    %c0_i32_0 = arith.constant 0 : i32
    %c0_i32_1 = arith.constant 0 : i32
    return %c0_i32, %c0_i32_0 : i32, i32
  }
  func.func @transform_1(%arg0: i32, %arg1: i32) -> (i32, i32, i32) {
    %c0_i32 = arith.constant 0 : i32
    %c0_i32_0 = arith.constant 0 : i32
    return %arg0, %c0_i32, %arg1 : i32, i32, i32
  }
  func.func @transform_2(%arg0: i32, %arg1: i32) -> (i32, i32, i32) {
    %c0_i32 = arith.constant 0 : i32
    %c0_i32_0 = arith.constant 0 : i32
    return %arg0, %c0_i32, %arg1 : i32, i32, i32
  }
}

</mosaic_0001>

<bundles_post_ra>
// kernel: tpu_custom_call.1
= control target key start
LH: loop header
LB: loop body
LE: loop exit
PB: predicated region body
PF: predicated region fallthrough
CT: control target
= control target key end

     0   :  { %7 = vsyncpa [#allocation3], 0  ;;  %s867_s0 = inlined_call_operand.hbm [shape: f32[4,8], index: 0, kind: input, shape index: {}]   ;;  %s868_s1 = inlined_call_operand.hbm [shape: f32[2,8,256], index: 1, kind: input, shape index: {}]   ;;  %s869_s2 = inlined_call_operand.hbm [shape: f32[2,4,256], index: 2, kind: output, shape index: {}]  }
   0x1   :  { %8 = vsyncpa [#allocation6], 0 }
   0x2   :  { %10 = vsyncpa [#allocation6 + $0x1], 0 }
   0x3   :  { %11 = vsyncpa [#allocation4], 0 }
   0x4   :  { %13 = vsyncpa [#allocation4 + $0x1], 0  ;;  %s650_s9 = smov 0   ;;  %s652_s10 = smov 0  }
   0x5   :  { %s654_s11 = smov 0   ;;  %s656_s12 = smov 0  }
   0x6   :  { %s658_s13 = smov 0   ;;  %s660_s14 = smov 0  }
   0x7 LB: > { %s391_s15 = sadd.s32 4294967295, %s629_s14   ;;  %s392_s16 = sadd.s32 4294967294, %s629_s14   ;;  %s629_s14 = sphi %s660_s14, %s19_s14   ;;  %s625_s13 = sphi %s658_s13, %s894_s13   ;;  %s621_s12 = sphi %s656_s12, %s893_s12   ;;  %s617_s11 = sphi %s654_s11, %s892_s11   ;;  %s613_s10 = sphi %s652_s10, %s891_s10   ;;  %s609_s9 = sphi %s650_s9, %s890_s9  }
   0x8   : > { %p74_p0 = scmp.ne.s32.totalorder %s613_s10, %s609_s9  ;;  %p684_p1 = scmp.eq.s32.totalorder %s391_s15, 0 }
   0x9   : > { %p688_p2 = scmp.eq.s32.totalorder %s391_s15, 1  ;;  %p106_p3 = scmp.eq.s32.totalorder %s392_s16, 1 }
   0xa   : > { %s874_s17 = scalar_select %p684_p1, 1, 0 }
   0xb   : > { %s875_s18 = scalar_select %p688_p2, 1, 0 }
   0xc   : > { %p694_p4 = por %p684_p1, %p74_p0  ;;  %p393_p5 = scmp.ge.s32.totalorder %s629_s14, 1 }
   0xd   : > { %p699_p6 = por %p106_p3, %p74_p0  ;;  %p113_p7 = scmp.lt.s32.totalorder %s629_s14, 3 }
   0xe   : > { %s876_s19 = scalar_select %p694_p4, 1, 0 }
   0xf   : > { %s877_s20 = scalar_select %p699_p6, 1, 0 }
  0x10   : > { %p704_p8 = pnand %p393_p5, %p113_p7  ;;  %s631_s22 = smov [#allocation2]  }
  0x11   : > { %s126_s23 = sshll.u32 %s631_s22, 4  ;;  %s31_s25 = sadd.s32 1, %s625_s13  ;;  %s127_s23 = int_to_ptr.vmem [resolvable:$true] %s126_s23 }
  0x12   : > { %s878_s21 = scalar_select %p704_p8, 1, 0 }
  0x13   : > { %p419_p10 = pneg %p704_p8  ;;  %s61_s26 = sadd.s32 1, %s617_s11 }
  0x14   : > { %p719_p12 = scmp.ge.s32.totalorder %s31_s25, 2  ;;  %s485_s30 = scalar_lea.hbm %s867_s0, 64 }
  0x15   : > { %p713_p11 = pnand %p419_p10, %p684_p1  ;;  %p486_p13 = scmp.ne.s32.totalorder %s867_s0, %s485_s30 }
  0x16   : > { %s880_s27 = scalar_select %p719_p12, 1, 0 }
  0x17   : > { %p487_p0 = pneg %p713_p11  ;;  %p492_p7 = scmp.lt.u32.totalorder %s485_s30, %s867_s0 }
  0x19   : > { %p488_p3 = pnand %p487_p0, %p486_p13 }
  0x1b   : > { %p489_p5 = pneg %p488_p3 }
  0x1d   : > { %p494_p10 = pnand %p492_p7, %p489_p5 }
  0x1f   : > { %497 = shalt.err (!%p494_p10)
}
  0x20   : > { %s498_s7 = scalar_lea.vmem %s127_s23, 64  ;;  %p506_p1 = scmp.lt.s32.totalorder %s127_s23, %s127_s23 }
  0x21   : > { %p499_p9 = scmp.ne.s32.totalorder %s127_s23, %s498_s7  ;;  %p507_p8 = scmp.lt.s32.totalorder %s498_s7, %s498_s7 }
  0x23   : > { %p501_p6 = pnand %p499_p9, %p487_p0  ;;  %p508_p2 = por %p507_p8, %p506_p1 }
  0x25   : > { %p502_p4 = pneg %p501_p6 }
  0x27   : > { %p509_p12 = pnand %p508_p2, %p502_p4 }
  0x29   : > { %512 = shalt.err (!%p509_p12)
}
  0x2a   : > { %422 = dma.hbm_to_vmem [thread:$0]  (!%p713_p11), %s867_s0, 64, %s127_s23, [#allocation3]  }
  0x2b   : > { %p881_p1 = scmp.ne.s32.totalorder %s880_s27, 0  ;;  %p68_p2 = scmp.ne.s32.totalorder %s617_s11, %s613_s10 }
  0x2c   : > { %p69_p4 = scmp.eq.s32.totalorder %s629_s14, 0  ;;  %p432_p6 = scmp.lt.s32.totalorder %s629_s14, 2 }
  0x2d   : > { %s896_s25 = smov (%p881_p1, %s31_s25), 0  ;;  %p882_p12 = scmp.ne.s32.totalorder %s875_s18, 0 }
  0x2e   : > { %s56_s16 = ssub.s32 %s625_s13, %s896_s25  ;;  %p70_p9 = por %p69_p4, %p68_p2 }
  0x2f   : > { %p59_p8 = scmp.eq.s32.totalorder %s56_s16, 0  ;;  %p751_p13 = por %p882_p12, %p68_p2 }
  0x30   : > { %s137_s24 = sand.u32 1, %s617_s11   ;;  %s409_s27 = sshll.u32 %s625_s13, 8 }
  0x31   : > { %s759_s28 = scalar_select %p59_p8, %s617_s11, %s61_s26  }
  0x32   : > { %s396_s23 = sshll.u32 %s137_s24, 4  ;;  %s765_s3 = scalar_lea.hbm %s868_s1, %s409_s27 }
  0x33   : > { %s141_s18 = scalar_lea.vmem [#allocation5], %s396_s23  ;;  %p769_p11 = pnand %p432_p6, %p70_p9 }
  0x34   : > { %s151_s4 = sshll.u32 %s141_s18, 4  ;;  %s138_s26 = scalar_lea.sflag [#allocation6], %s137_s24  ;;  %s767_s4 = int_to_ptr.vmem [resolvable:$true] %s151_s4 }
  0x35   : > { %s513_s6 = scalar_lea.hbm %s765_s3, 256  ;;  %p515_p3 = pneg %p769_p11 }
  0x36   : > { %p514_p0 = scmp.ne.s32.totalorder %s765_s3, %s513_s6  ;;  %s518_s15 = scalar_lea.hbm %s868_s1, 512 }
  0x37   : > { %p519_p10 = scmp.lt.u32.totalorder %s765_s3, %s868_s1  ;;  %p520_p1 = scmp.lt.u32.totalorder %s518_s15, %s513_s6 }
  0x38   : > { %p516_p5 = pnand %p515_p3, %p514_p0  ;;  %p522_p4 = scmp.lt.u32.totalorder %s513_s6, %s765_s3 }
  0x39   : > { %p521_p2 = por %p520_p1, %p519_p10 }
  0x3a   : > { %p517_p7 = pneg %p516_p5 }
  0x3b   : > { %p523_p6 = por %p522_p4, %p521_p2 }
  0x3d   : > { %p524_p8 = pnand %p523_p6, %p517_p7 }
  0x3f   : > { %527 = shalt.err (!%p524_p8)
}
  0x40   : > { %s528_s24 = scalar_lea.vmem %s767_s4, 256  ;;  %s632_s27 = smov [#allocation5]  }
  0x41   : > { %p529_p9 = scmp.ne.s32.totalorder %s767_s4, %s528_s24  ;;  %s533_s29 = sshll.u32 %s632_s27, 4  ;;  %s534_s29 = int_to_ptr.vmem [resolvable:$false] %s533_s29 }
  0x42   : > { %s535_s30 = scalar_lea.vmem %s534_s29, 512  ;;  %p536_p5 = scmp.lt.s32.totalorder %s767_s4, %s534_s29 }
  0x43   : > { %p531_p12 = pnand %p529_p9, %p515_p3  ;;  %p537_p10 = scmp.lt.s32.totalorder %s535_s30, %s528_s24 }
  0x45   : > { %p532_p0 = pneg %p531_p12  ;;  %p538_p1 = por %p537_p10, %p536_p5 }
  0x47   : > { %p539_p2 = pnand %p538_p1, %p532_p0 }
  0x49   : > { %542 = shalt.err (!%p539_p2)
}
  0x4a   : > { %426 = dma.hbm_to_vmem [thread:$0]  (!%p769_p11), %s765_s3, 256, %s767_s4, %s138_s26  }
  0x4b   : > { %p885_p7 = scmp.ne.s32.totalorder %s878_s21, 0 }
  0x4c   : > { %p886_p3 = scmp.ne.s32.totalorder (!%p885_p7), %s874_s17, 0 }
  0x4d   : > { %160 = sbr.rel (%p885_p7) target bundleno = 323 (0x143), region = 28 }
  0x54   : > { %596 = dma.done.wait (%p886_p3), [#allocation3], 64  }
  0x55   : > { %598 = vsyncadd (%p886_p3), [#allocation3], 4294967232  ;;  %s805_s18 = sand.u32 1, %s613_s10   ;;  %p887_p4 = scmp.ne.s32.totalorder %s876_s19, 0 }
  0x56   : > { %s401_s6 = sshll.u32 %s805_s18, 4  ;;  %s167_s5 = scalar_lea.sflag [#allocation6], %s805_s18 }
  0x57   : > { %s170_s7 = scalar_lea.vmem [#allocation5], %s401_s6 }
  0x58   : > { %600 = dma.done.wait (%p887_p4), %s167_s5, 256  }
  0x59   : > { %602 = vsyncadd (%p887_p4), %s167_s5, 4294967040  ;;  %v633_v0 = vmov 0.0   ;;  %v195_v1 = vld [vmem:[%s170_s7 + $0x8] sm:$0xff]  ;;  %v194_v2 = vld [vmem:[%s170_s7] sm:$0xff]  ;;  %vm196_vm0 = vcmask 64512   ;;  %s402_s17 = sshll.u32 %s805_s18, 3 }
  0x5a   : > { %264 = vmatprep.mubr.f32.mxu0 %v633_v0  ;;  %v193_v3 = vld [vmem:[#allocation2] sm:$0xf]  ;;  %200 = vmatprep.subr.mxu0 %v195_v1  ;;  %s410_s21 = sshll.u32 %s621_s12, 7  ;;  %s190_s19 = scalar_lea.vmem [#allocation7], %s402_s17 }
  0x5b   : > { %201 = vmatpush1.msra.mxu0 %v194_v2  ;;  %s295_s3 = sshll.u32 %s190_s19, 4  ;;  %s818_s8 = scalar_lea.hbm %s869_s2, %s410_s21  ;;  %s820_s3 = int_to_ptr.vmem [resolvable:$true] %s295_s3 }
  0x5c   : > { %403 = vmatmul.mubr.msk.f32.vlgmr.msra.gmra.mrb[0].mxu0 %vm196_vm0, %v193_v3  ;;  %s279_s15 = scalar_lea.sflag [#allocation4], %s805_s18  ;;  %s543_s16 = scalar_lea.vmem %s820_s3, 128 }
  0x5d   : > { %p544_p11 = scmp.ne.s32.totalorder %s820_s3, %s543_s16  ;;  %s634_s12 = smov [#allocation7]  }
  0x5e   : > { %s547_s23 = sshll.u32 %s634_s12, 4  ;;  %s548_s23 = int_to_ptr.vmem [resolvable:$false] %s547_s23 }
  0x5f   : > { %p545_p6 = pnand %p544_p11, %p751_p13  ;;  %s549_s24 = scalar_lea.vmem %s548_s23, 256 }
  0x60   : > { %p550_p9 = scmp.lt.s32.totalorder %s820_s3, %s548_s23  ;;  %p551_p12 = scmp.lt.s32.totalorder %s549_s24, %s543_s16 }
  0x61   : > { %p546_p8 = pneg %p545_p6 }
  0x62   : > { %p552_p0 = por %p551_p12, %p550_p9 }
  0x64   : > { %p553_p5 = pnand %p552_p0, %p546_p8 }
 0x12f   : > { %v266_v4 = vpop.f32.mrb[0].mxu0 }
 0x130   : > { %v271_v5 = vmul.f32 0.33333334, %v266_v4  ;;  %v268_v6 = vpop.f32.mrb[1].mxu0 }
 0x131   : > { %v272_v7 = vmul.f32 0.33333334, %v268_v6 }
 0x133   : > { %v275_v8 = vcombine.low %v271_v5, %v272_v7 }
 0x135   : > { %277 = vst [vmem:[%s190_s19] sm:$0xff] %v275_v8 }
 0x136   : > { %556 = shalt.err (!%p553_p5)
}
 0x137   : > { %s557_s27 = scalar_lea.hbm %s818_s8, 128  ;;  %s561_s18 = scalar_lea.hbm %s869_s2, 256 }
 0x138   : > { %p558_p10 = scmp.ne.s32.totalorder %s818_s8, %s557_s27  ;;  %p562_p7 = scmp.lt.u32.totalorder %s818_s8, %s869_s2 }
 0x139   : > { %p563_p3 = scmp.lt.u32.totalorder %s561_s18, %s557_s27  ;;  %p565_p11 = scmp.lt.u32.totalorder %s557_s27, %s818_s8 }
 0x13a   : > { %p559_p1 = pnand %p558_p10, %p751_p13 }
 0x13b   : > { %p564_p4 = por %p563_p3, %p562_p7 }
 0x13c   : > { %p560_p2 = pneg %p559_p1 }
 0x13d   : > { %p566_p6 = por %p565_p11, %p564_p4 }
 0x13f   : > { %p567_p8 = pnand %p566_p6, %p560_p2 }
 0x141   : > { %570 = shalt.err (!%p567_p8)
}
 0x142   : > { %417 = dma.vmem_to_hbm [thread:$0]  (%p751_p13), %s820_s3, 128, %s818_s8, %s279_s15  }
 0x143 PF: > { %s307_s7 = sand.u32 1, %s609_s9   ;;  %p888_p9 = scmp.ne.s32.totalorder %s877_s20, 0 }
 0x144   : > { %p889_p12 = scmp.ge.s32.totalorder %s629_s14, 2  ;;  %s308_s17 = scalar_lea.sflag [#allocation4], %s307_s7 }
 0x146   : > { %p428_p0 = pnand %p889_p12, %p888_p9 }
 0x148   : > { %604 = dma.done.wait (!%p428_p0), %s308_s17, 128  }
 0x149   : > { %606 = vsyncadd (!%p428_p0), %s308_s17, 4294967168  ;;  %s19_s14 = sadd.s32 1, %s629_s14   ;;  %s890_s9 = smov %s613_s10 }
 0x14a   : > { %p16_p5 = scmp.ge.s32.totalorder %s19_s14, 4   ;;  %s891_s10 = smov %s617_s11 }
 0x14b   : > { %s892_s11 = smov %s759_s28  ;;  %s893_s12 = smov %s625_s13 }
 0x14c   : > { %s894_s13 = smov %s896_s25  ;;  %18 = sbr.rel (!%p16_p5) target bundleno = 7 (0x7), region = 78 }
 0x153   :  { %313 = vsyncpa [#allocation3], 1 }
 0x154   :  { %315 = vsyncpa [#allocation3 + $0x1], 1 }
 0x155   :  { %316 = vsyncpa [#allocation6], 1 }
 0x156   :  { %318 = vsyncpa [#allocation6 + $0x1], 1 }
 0x157   :  { %319 = vsyncpa [#allocation4], 1 }
 0x158   :  { %321 = vsyncpa [#allocation4 + $0x1], 1 }

</bundles_post_ra>
